<compile_context>
chip_gen: v6e
topology: v6e:2x2x1
jax: 0.10.0
libtpu: 0.0.40
codegen_flags: <defaults>
</compile_context>

<pallas_src>
import jax
import jax.numpy as jnp
from jax.experimental import pallas as pl
from jax.experimental.pallas import tpu as pltpu

_LANES = 128    # TPU lane width
_TB_MAX = 8192  # max rows per batch tile (1 MiB of x per tile at D=32)


def _mlp_kernel(x_ref, w1_ref, b1_ref, w2_ref, b2_ref, w3_ref, b3_ref, o_ref):
    """One batch tile of Linear->ReLU->Linear->ReLU->Linear, lane-dense output.

    x_ref : (TB, D)
    w1_ref: (D, 16)    b1_ref: (1, 16)
    w2_ref: (8, 16)    b2_ref: (8, 1)     (PyTorch (out, in) layout used as-is)
    w3_ref: (1, 8)     b3_ref: (1, 1)
    o_ref : (1, TB)    one scalar per row, packed along the lane axis
    """
    x = x_ref[...]                                                        # (TB, D)
    h1 = jnp.dot(x, w1_ref[...], preferred_element_type=jnp.float32) + b1_ref[...]
    h1 = jnp.maximum(h1, 0.0)                                             # (TB, 16)

    # Single small transpose on the XLU puts the batch on the lane axis for the
    # rest of the network -> lane-dense output with no padded 128-wide layers.
    h1t = h1.T                                                            # (16, TB)

    h2t = jnp.dot(w2_ref[...], h1t, preferred_element_type=jnp.float32) + b2_ref[...]
    h2t = jnp.maximum(h2t, 0.0)                                           # (8, TB)

    out_t = jnp.dot(w3_ref[...], h2t, preferred_element_type=jnp.float32) + b3_ref[...]
    o_ref[...] = out_t.astype(o_ref.dtype)                                # (1, TB)


def _pick_tile(batch):
    return min(_TB_MAX, pl.next_power_of_2(max(batch, _LANES)))


def classifier_forward(x, params, *, tile_rows=None):
    """x: (B, input_dim) float32; params in PyTorch nn.Linear layout.

    Returns (B,) float32, matching Classifier.forward (the .squeeze(1)).
    `tile_rows` (multiple of 128) optionally overrides the batch tile size.
    """
    w1, b1, w2, b2, w3, b3 = params   # (16,D),(16,),(8,16),(8,),(1,8),(1,)
    B, D = x.shape

    # ---- pack parameters into kernel layout (tiny, one-off) -----------------
    w1k = w1.T.astype(jnp.float32)                    # (D, 16)
    b1k = b1.reshape(1, 16).astype(jnp.float32)       # (1, 16)
    w2k = w2.astype(jnp.float32)                      # (8, 16)  (out, in) as-is
    b2k = b2.reshape(8, 1).astype(jnp.float32)        # (8, 1)
    w3k = w3.reshape(1, 8).astype(jnp.float32)        # (1, 8)
    b3k = b3.reshape(1, 1).astype(jnp.float32)        # (1, 1)

    # ---- batch tiling --------------------------------------------------------
    tb = tile_rows if tile_rows is not None else _pick_tile(B)
    assert tb % _LANES == 0, "tile_rows must be a multiple of 128"
    grid = pl.cdiv(B, tb)
    pB = grid * tb
    if pB != B:                                  # pad tail so every block is full
        x = jnp.pad(x, ((0, pB - B), (0, 0)))

    cost = pl.CostEstimate(
        flops=2 * B * (D * 16 + 16 * 8 + 8 * 1),
        transcendentals=0,
        bytes_accessed=4 * (B * D + B) + 4 * (D * 16 + 16 + 8 * 16 + 8 + 8 + 1),
    )

    const = lambda i: (0, 0)                     # weights stay VMEM-resident
    out = pl.pallas_call(
        _mlp_kernel,
        out_shape=jax.ShapeDtypeStruct((1, pB), jnp.float32),
        grid=(grid,),
        in_specs=[
            pl.BlockSpec((tb, D), lambda i: (i, 0)),      # x: streamed per tile
            pl.BlockSpec((D, 16), const),
            pl.BlockSpec((1, 16), const),
            pl.BlockSpec((8, 16), const),
            pl.BlockSpec((8, 1), const),
            pl.BlockSpec((1, 8), const),
            pl.BlockSpec((1, 1), const),
        ],
        out_specs=pl.BlockSpec((1, tb), lambda i: (0, i)),  # lane-dense writeback
        compiler_params=pltpu.CompilerParams(
            dimension_semantics=("parallel",),            # megacore sharding on v7x
            vmem_limit_bytes=32 * 1024 * 1024,
        ),
        cost_estimate=cost,
    )(x, w1k, b1k, w2k, b2k, w3k, b3k)

    return out.reshape(pB)[:B]                   # squeeze(1) of the PyTorch module


def init_params(key, input_dim):
    """Deterministic synthetic parameters in PyTorch nn.Linear layout: W (out,in), b (out,)."""
    ks = jax.random.split(key, 6)

    def lin(kw, kb, fan_in, fan_out):
        bound = 1.0 / jnp.sqrt(fan_in)
        w = jax.random.uniform(kw, (fan_out, fan_in), jnp.float32, -bound, bound)
        b = jax.random.uniform(kb, (fan_out,), jnp.float32, -bound, bound)
        return w, b

    w1, b1 = lin(ks[0], ks[1], input_dim, 16)
    w2, b2 = lin(ks[2], ks[3], 16, 8)
    w3, b3 = lin(ks[4], ks[5], 8, 1)
    return (w1, b1, w2, b2, w3, b3)


def _reference(x, params):
    w1, b1, w2, b2, w3, b3 = params
    h = jnp.maximum(x @ w1.T + b1, 0.0)
    h = jnp.maximum(h @ w2.T + b2, 0.0)
    return (h @ w3.T + b3)[:, 0]


if __name__ == "__main__":
    key = jax.random.PRNGKey(0)
    k_x, k_p, k_x2 = jax.random.split(key, 3)

    batch, input_dim = 8, 32
    params = init_params(k_p, input_dim)

    # Small single-tile case.
    x = jax.random.normal(k_x, (batch, input_dim), dtype=jnp.float32)
    y = classifier_forward(x, params)
    jax.block_until_ready(y)
    ref = _reference(x, params)
    assert y.shape == (batch,)
    assert jnp.allclose(y, ref, atol=1e-5, rtol=1e-5)

    # Multi-tile + ragged-tail case (exercises the grid, resident weights, padding).
    batch2 = 300
    x2 = jax.random.normal(k_x2, (batch2, input_dim), dtype=jnp.float32)
    y2 = classifier_forward(x2, params, tile_rows=128)   # grid = 3, tail padded
    jax.block_until_ready(y2)
    ref2 = _reference(x2, params)
    assert y2.shape == (batch2,)
    assert jnp.allclose(y2, ref2, atol=1e-5, rtol=1e-5)

    print("KERNEL_OK")
</pallas_src>

<mosaic_0001>
module attributes {stable_mosaic.version = 11 : i64} {
  func.func @_mlp_kernel(%arg0: i32, %arg1: memref<128x32xf32, #tpu.memory_space<vmem>>, %arg2: memref<32x16xf32, #tpu.memory_space<vmem>>, %arg3: memref<1x16xf32, #tpu.memory_space<vmem>>, %arg4: memref<8x16xf32, #tpu.memory_space<vmem>>, %arg5: memref<8x1xf32, #tpu.memory_space<vmem>>, %arg6: memref<1x8xf32, #tpu.memory_space<vmem>>, %arg7: memref<1x1xf32, #tpu.memory_space<vmem>>, %arg8: memref<1x128xf32, #tpu.memory_space<vmem>>) attributes {dimension_semantics = [#tpu.dimension_semantics<parallel>], iteration_bounds = array<i64: 1>, scalar_prefetch = 0 : i64, scratch_operands = 0 : i64, tpu.core_type = #tpu.core_type<tc>, window_params = [{transform_indices = @transform_0, window_bounds = array<i64: 128, 32>}, {pipeline_mode = #tpu.pipeline_mode<synchronous>, transform_indices = @transform_1, window_bounds = array<i64: 32, 16>}, {pipeline_mode = #tpu.pipeline_mode<synchronous>, transform_indices = @transform_2, window_bounds = array<i64: 1, 16>}, {pipeline_mode = #tpu.pipeline_mode<synchronous>, transform_indices = @transform_3, window_bounds = array<i64: 8, 16>}, {pipeline_mode = #tpu.pipeline_mode<synchronous>, transform_indices = @transform_4, window_bounds = array<i64: 8, 1>}, {pipeline_mode = #tpu.pipeline_mode<synchronous>, transform_indices = @transform_5, window_bounds = array<i64: 1, 8>}, {pipeline_mode = #tpu.pipeline_mode<synchronous>, transform_indices = @transform_6, window_bounds = array<i64: 1, 1>}, {transform_indices = @transform_7, window_bounds = array<i64: 1, 128>}]} {
    %c0 = arith.constant 0 : index
    %c0_0 = arith.constant 0 : index
    %0 = vector.load %arg1[%c0, %c0_0] : memref<128x32xf32, #tpu.memory_space<vmem>>, vector<128x32xf32>
    %c0_1 = arith.constant 0 : index
    %c0_2 = arith.constant 0 : index
    %1 = vector.load %arg2[%c0_1, %c0_2] : memref<32x16xf32, #tpu.memory_space<vmem>>, vector<32x16xf32>
    %cst = arith.constant dense<0.000000e+00> : vector<128x16xf32>
    %2 = tpu.matmul %0, %1, %cst {dimension_numbers = #tpu.dot_dimension_numbers<[1], [0], [0], [1], [0, 0, 1, 1], [], []>} : vector<128x32xf32>, vector<32x16xf32>, vector<128x16xf32> -> vector<128x16xf32>
    %c0_3 = arith.constant 0 : index
    %c0_4 = arith.constant 0 : index
    %3 = vector.load %arg3[%c0_3, %c0_4] : memref<1x16xf32, #tpu.memory_space<vmem>>, vector<1x16xf32>
    %4 = vector.broadcast %3 : vector<1x16xf32> to vector<128x16xf32>
    %5 = arith.addf %2, %4 : vector<128x16xf32>
    %cst_5 = arith.constant 0.000000e+00 : f32
    %6 = vector.broadcast %cst_5 : f32 to vector<128x16xf32>
    %7 = arith.maximumf %5, %6 : vector<128x16xf32>
    %8 = tpu.transpose %7, [1, 0] : vector<128x16xf32> -> vector<16x128xf32>
    %c0_6 = arith.constant 0 : index
    %c0_7 = arith.constant 0 : index
    %9 = vector.load %arg4[%c0_6, %c0_7] : memref<8x16xf32, #tpu.memory_space<vmem>>, vector<8x16xf32>
    %cst_8 = arith.constant dense<0.000000e+00> : vector<8x128xf32>
    %10 = tpu.matmul %9, %8, %cst_8 {dimension_numbers = #tpu.dot_dimension_numbers<[1], [0], [0], [1], [0, 0, 1, 1], [], []>} : vector<8x16xf32>, vector<16x128xf32>, vector<8x128xf32> -> vector<8x128xf32>
    %c0_9 = arith.constant 0 : index
    %c0_10 = arith.constant 0 : index
    %11 = vector.load %arg5[%c0_9, %c0_10] : memref<8x1xf32, #tpu.memory_space<vmem>>, vector<8x1xf32>
    %12 = vector.broadcast %11 : vector<8x1xf32> to vector<8x128xf32>
    %13 = arith.addf %10, %12 : vector<8x128xf32>
    %cst_11 = arith.constant 0.000000e+00 : f32
    %14 = vector.broadcast %cst_11 : f32 to vector<8x128xf32>
    %15 = arith.maximumf %13, %14 : vector<8x128xf32>
    %c0_12 = arith.constant 0 : index
    %c0_13 = arith.constant 0 : index
    %16 = vector.load %arg6[%c0_12, %c0_13] : memref<1x8xf32, #tpu.memory_space<vmem>>, vector<1x8xf32>
    %cst_14 = arith.constant dense<0.000000e+00> : vector<1x128xf32>
    %17 = tpu.matmul %16, %15, %cst_14 {dimension_numbers = #tpu.dot_dimension_numbers<[1], [0], [0], [1], [0, 0, 1, 1], [], []>} : vector<1x8xf32>, vector<8x128xf32>, vector<1x128xf32> -> vector<1x128xf32>
    %c0_15 = arith.constant 0 : index
    %c0_16 = arith.constant 0 : index
    %18 = vector.load %arg7[%c0_15, %c0_16] : memref<1x1xf32, #tpu.memory_space<vmem>>, vector<1x1xf32>
    %19 = vector.broadcast %18 : vector<1x1xf32> to vector<1x128xf32>
    %20 = arith.addf %17, %19 : vector<1x128xf32>
    %c0_17 = arith.constant 0 : index
    %c0_18 = arith.constant 0 : index
    %21 = vector.load %arg8[%c0_17, %c0_18] : memref<1x128xf32, #tpu.memory_space<vmem>>, vector<1x128xf32>
    tpu.vector_store %arg8[%c0_17, %c0_18], %20 {strides = array<i32>} : memref<1x128xf32, #tpu.memory_space<vmem>>, vector<1x128xf32>,
    return
  }
  func.func @transform_0(%arg0: i32) -> (i32, i32) {
    %c0_i32 = arith.constant 0 : i32
    %c0_i32_0 = arith.constant 0 : i32
    return %arg0, %c0_i32 : i32, i32
  }
  func.func @transform_1(%arg0: i32) -> (i32, i32) {
    %c0_i32 = arith.constant 0 : i32
    %c0_i32_0 = arith.constant 0 : i32
    %c0_i32_1 = arith.constant 0 : i32
    return %c0_i32, %c0_i32_0 : i32, i32
  }
  func.func @transform_2(%arg0: i32) -> (i32, i32) {
    %c0_i32 = arith.constant 0 : i32
    %c0_i32_0 = arith.constant 0 : i32
    %c0_i32_1 = arith.constant 0 : i32
    return %c0_i32, %c0_i32_0 : i32, i32
  }
  func.func @transform_3(%arg0: i32) -> (i32, i32) {
    %c0_i32 = arith.constant 0 : i32
    %c0_i32_0 = arith.constant 0 : i32
    %c0_i32_1 = arith.constant 0 : i32
    return %c0_i32, %c0_i32_0 : i32, i32
  }
  func.func @transform_4(%arg0: i32) -> (i32, i32) {
    %c0_i32 = arith.constant 0 : i32
    %c0_i32_0 = arith.constant 0 : i32
    %c0_i32_1 = arith.constant 0 : i32
    return %c0_i32, %c0_i32_0 : i32, i32
  }
  func.func @transform_5(%arg0: i32) -> (i32, i32) {
    %c0_i32 = arith.constant 0 : i32
    %c0_i32_0 = arith.constant 0 : i32
    %c0_i32_1 = arith.constant 0 : i32
    return %c0_i32, %c0_i32_0 : i32, i32
  }
  func.func @transform_6(%arg0: i32) -> (i32, i32) {
    %c0_i32 = arith.constant 0 : i32
    %c0_i32_0 = arith.constant 0 : i32
    %c0_i32_1 = arith.constant 0 : i32
    return %c0_i32, %c0_i32_0 : i32, i32
  }
  func.func @transform_7(%arg0: i32) -> (i32, i32) {
    %c0_i32 = arith.constant 0 : i32
    %c0_i32_0 = arith.constant 0 : i32
    return %c0_i32, %arg0 : i32, i32
  }
}

</mosaic_0001>

<bundles_post_ra>
// kernel: tpu_custom_call.1
= control target key start
LH: loop header
LB: loop body
LE: loop exit
PB: predicated region body
PF: predicated region fallthrough
CT: control target
= control target key end

     0   :  { %s852_s0 = inlined_call_operand.vmem [shape: f32[128,32], index: 0, kind: input, shape index: {}]   ;;  %s853_s1 = inlined_call_operand.vmem [shape: f32[32,16], index: 1, kind: input, shape index: {}]   ;;  %s854_s2 = inlined_call_operand.vmem [shape: f32[1,16], index: 2, kind: input, shape index: {}]   ;;  %s855_s3 = inlined_call_operand.vmem [shape: f32[8,16], index: 3, kind: input, shape index: {}]   ;;  %s856_s4 = inlined_call_operand.vmem [shape: f32[8,1], index: 4, kind: input, shape index: {}]   ;;  %s857_s5 = inlined_call_operand.vmem [shape: f32[1,8], index: 5, kind: input, shape index: {}]   ;;  %s858_s6 = inlined_call_operand.<no memory space> [shape: f32[1,1], index: 6, kind: input, shape index: {}]   ;;  %s859_s7 = inlined_call_operand.hbm [shape: f32[1,128], index: 7, kind: output, shape index: {}]  }
   0x1   :  { %v12_v0 = vstv %s858_s6 }
   0x2   :  { %13 = vst [vmem:[#allocation2] sm:$0x1] %v12_v0 }
   0x3   :  { %v48_v1 = vld [vmem:[%s853_s1 + $0x18] sm:$0xff]  ;;  %v47_v2 = vld [vmem:[%s853_s1 + $0x10] sm:$0xff]  ;;  %vm56_vm0 = vcmask 261120   ;;  %v29_v3 = vld [vmem:[%s852_s0] sm:$0xff] }
   0x4   :  { %570 = vmatprep.subr.mxu0 %v48_v1  ;;  %v46_v4 = vld [vmem:[%s853_s1 + $0x8] sm:$0xff]  ;;  %578 = vmatprep.mubr.msk.f32.mxu0 %vm56_vm0, %v29_v3  ;;  %v45_v5 = vld [vmem:[%s853_s1] sm:$0xff] }
   0x5   :  { %571 = vmatpush3.msra.mxu0 %v48_v1  ;;  %v30_v6 = vld [vmem:[%s852_s0 + $0x8] sm:$0xff] }
   0x6   :  { %572 = vmatprep.subr.mxu0 %v47_v2 }
   0x7   :  { %573 = vmatpush3.msra.mxu0 %v47_v2 }
   0x8   :  { %574 = vmatprep.subr.mxu0 %v46_v4 }
   0x9   :  { %575 = vmatpush3.msra.mxu0 %v46_v4 }
   0xa   :  { %14 = vsyncpa [#allocation4], 0  ;;  %576 = vmatprep.subr.mxu0 %v45_v5  ;;  %v31_v7 = vld [vmem:[%s852_s0 + $0x10] sm:$0xff]  ;;  %v32_v8 = vld [vmem:[%s852_s0 + $0x18] sm:$0xff]  ;;  %v669_v21 = vmov 0.0   ;;  %vm670_vm1 = vmmov 0  }
   0xb   :  { %577 = vmatpush3.msra.mxu0 %v45_v5  ;;  %v33_v9 = vld [vmem:[%s852_s0 + $0x20] sm:$0xff]  ;;  %v34_v10 = vld [vmem:[%s852_s0 + $0x28] sm:$0xff]  ;;  %v35_v11 = vld [vmem:[%s852_s0 + $0x30] sm:$0xff]  ;;  %602 = vmatprep.subr.mxu1 %v669_v21  ;;  %v671_v23 = vmov 0   ;;  %vm273_vm2 = vcmask 130048   ;;  %vm407_vm3 = vcmask 64512  }
   0xc   :  { %579 = vmatmul.mubr.msk.f32.vlgmr.msra.gmra.mxu0 %vm56_vm0, %v30_v6  ;;  %v36_v12 = vld [vmem:[%s852_s0 + $0x38] sm:$0xff]  ;;  %v37_v13 = vld [vmem:[%s852_s0 + $0x40] sm:$0xff]  ;;  %v38_v14 = vld [vmem:[%s852_s0 + $0x48] sm:$0xff]  ;;  %637 = vmatprep.subr.mxu0 %v669_v21  ;;  %s672_s21 = smov [#allocation3]  }
   0xd   :  { %581 = vmatprep.mubr.msk.f32.mxu0 %vm56_vm0, %v31_v7  ;;  %v39_v15 = vld [vmem:[%s852_s0 + $0x50] sm:$0xff]  ;;  %v40_v16 = vld [vmem:[%s852_s0 + $0x58] sm:$0xff]  ;;  %v41_v17 = vld [vmem:[%s852_s0 + $0x60] sm:$0xff]  ;;  %634 = vmatprep.mubr.msk.f32.mxu1 %vm670_vm1, %v669_v21 }
   0xe   :  { %v42_v18 = vld [vmem:[%s852_s0 + $0x68] sm:$0xff]  ;;  %v43_v19 = vld [vmem:[%s852_s0 + $0x70] sm:$0xff]  ;;  %v44_v20 = vld [vmem:[%s852_s0 + $0x78] sm:$0xff]  ;;  %646 = vset.pattern.permute.xlu0 %v671_v23 }
   0xf   :  { %v267_v22 = vld [vmem:[%s856_s4] sm:$0xff] }
  0x10   :  { %582 = vmatmul.mubr.msk.f32.gmra.mxu0 %vm56_vm0, %v32_v8  ;;  %270 = vperm.xlu0 %646, %v267_v22   ;;  %v397_v24 = vld [vmem:[#allocation2] sm:$0x1] }
  0x11   :  { %584 = vmatprep.mubr.msk.f32.mxu0 %vm56_vm0, %v33_v9  ;;  %v496_v39 = vld [vmem:[%s854_s2] ss:$0 sm:$0xff] }
  0x14   :  { %585 = vmatmul.mubr.msk.f32.gmra.mxu0 %vm56_vm0, %v34_v10  ;;  %400 = vperm.xlu0 %646, %v397_v24   ;;  %v266_v10 = vld [vmem:[%s855_s3] sm:$0xff]  ;;  %s488_s3 = sshll.u32 %s672_s21, 4  ;;  %s489_s3 = int_to_ptr.vmem [resolvable:$true] %s488_s3 }
  0x15   :  { %587 = vmatprep.mubr.msk.f32.mxu0 %vm56_vm0, %v35_v11  ;;  %s647_s22 = scalar_lea.vmem %s489_s3, 16  ;;  %s651_s23 = scalar_lea.vmem %s489_s3, 32 }
  0x16   :  { %p648_p0 = scmp.ne.s32.totalorder %s489_s3, %s647_s22  ;;  %p652_p1 = scmp.lt.s32.totalorder %s489_s3, %s489_s3 }
  0x17   :  { %p653_p2 = scmp.lt.s32.totalorder %s651_s23, %s647_s22 }
  0x18   :  { %588 = vmatmul.mubr.msk.f32.gmra.mxu0 %vm56_vm0, %v36_v12 }
  0x19   :  { %590 = vmatprep.mubr.msk.f32.mxu0 %vm56_vm0, %v37_v13  ;;  %p654_p3 = por %p653_p2, %p652_p1 }
  0x1b   :  { %p655_p4 = pnand %p654_p3, %p648_p0 }
  0x1c   :  { %591 = vmatmul.mubr.msk.f32.gmra.mxu0 %vm56_vm0, %v38_v14 }
  0x1d   :  { %593 = vmatprep.mubr.msk.f32.mxu0 %vm56_vm0, %v39_v15 }
  0x20   :  { %594 = vmatmul.mubr.msk.f32.gmra.mxu0 %vm56_vm0, %v40_v16  ;;  %v396_v16 = vld [vmem:[%s857_s5] sm:$0x1] }
  0x21   :  { %596 = vmatprep.mubr.msk.f32.mxu0 %vm56_vm0, %v41_v17  ;;  %v403_v17 = vlaneseq }
  0x24   :  { %597 = vmatmul.mubr.msk.f32.gmra.mxu0 %vm56_vm0, %v42_v18  ;;  %v404_v18 = vshrl.u32 %v403_v17, 7 }
  0x25   :  { %599 = vmatprep.mubr.msk.f32.mxu0 %vm56_vm0, %v43_v19 }
  0x26   :  { %v405_v19 = vsub.s32 0, %v404_v18 }
  0x28   :  { %600 = vmatmul.mubr.msk.f32.gmra.mxu0 %vm56_vm0, %v44_v20 }
  0x29   :  { %639 = vmatprep.mubr.msk.f32.mxu0 %vm670_vm1, %v669_v21 }
  0x8b   :  { %v271_v11 = vpop.permute.xlu0 %270 }
  0x8f   :  { %v401_v20 = vpop.permute.xlu0 %400 }
  0xcc   :  { %v799_v25 = vpop.f32.mrf.mxu0 }
  0xcd   :  { %v177_v5 = vadd.f32 %v799_v25, %v496_v39 }
  0xce   :  { %v801_v26 = vpop.f32.mrf.mxu0 }
  0xcf   :  { %v251_v7 = vmax.f32 %v177_v5, 0.0  ;;  %v172_v8 = vadd.f32 %v496_v39, %v801_v26 }
  0xd0   :  { %v583_v27 = vpop.f32.mrf.mxu0 }
  0xd1   :  { %v187_v1 = vadd.f32 %v583_v27, %v496_v39  ;;  %v250_v9 = vmax.f32 %v172_v8, 0.0 }
  0xd2   :  { %v803_v28 = vpop.f32.mrf.mxu0 }
  0xd3   :  { %v253_v3 = vmax.f32 %v187_v1, 0.0  ;;  %v182_v4 = vadd.f32 %v496_v39, %v803_v28 }
  0xd4   :  { %v586_v29 = vpop.f32.mrf.mxu0 }
  0xd5   :  { %v197_v61 = vadd.f32 %v586_v29, %v496_v39  ;;  %v252_v6 = vmax.f32 %v182_v4, 0.0 }
  0xd6   :  { %v191_v30 = vpop.f32.mrf.mxu0 }
  0xd7   :  { %v255_v63 = vmax.f32 %v197_v61, 0.0  ;;  %v192_v0 = vadd.f32 %v496_v39, %v191_v30 }
  0xd8   :  { %v589_v31 = vpop.f32.mrf.mxu0 }
  0xd9   :  { %v207_v57 = vadd.f32 %v589_v31, %v496_v39  ;;  %v254_v2 = vmax.f32 %v192_v0, 0.0 }
  0xda   :  { %v201_v32 = vpop.f32.mrf.mxu0 }
  0xdb   :  { %v257_v59 = vmax.f32 %v207_v57, 0.0  ;;  %v202_v60 = vadd.f32 %v496_v39, %v201_v32 }
  0xdc   :  { %v592_v33 = vpop.f32.mrf.mxu0 }
  0xdd   :  { %v217_v53 = vadd.f32 %v592_v33, %v496_v39  ;;  %v256_v62 = vmax.f32 %v202_v60, 0.0 }
  0xde   :  { %v211_v34 = vpop.f32.mrf.mxu0 }
  0xdf   :  { %v259_v55 = vmax.f32 %v217_v53, 0.0  ;;  %v212_v56 = vadd.f32 %v496_v39, %v211_v34 }
  0xe0   :  { %v595_v35 = vpop.f32.mrf.mxu0 }
  0xe1   :  { %v227_v49 = vadd.f32 %v595_v35, %v496_v39  ;;  %v258_v58 = vmax.f32 %v212_v56, 0.0 }
  0xe2   :  { %v221_v36 = vpop.f32.mrf.mxu0 }
  0xe3   :  { %v261_v51 = vmax.f32 %v227_v49, 0.0  ;;  %v222_v52 = vadd.f32 %v496_v39, %v221_v36 }
  0xe4   :  { %v598_v37 = vpop.f32.mrf.mxu0 }
  0xe5   :  { %v237_v45 = vadd.f32 %v598_v37, %v496_v39  ;;  %v260_v54 = vmax.f32 %v222_v52, 0.0 }
  0xe6   :  { %v231_v38 = vpop.f32.mrf.mxu0 }
  0xe7   :  { %v263_v47 = vmax.f32 %v237_v45, 0.0  ;;  %v232_v48 = vadd.f32 %v496_v39, %v231_v38 }
  0xe8   :  { %v601_v40 = vpop.f32.mrf.mxu0 }
  0xe9   :  { %v247_v41 = vadd.f32 %v601_v40, %v496_v39  ;;  %v262_v50 = vmax.f32 %v232_v48, 0.0 }
  0xea   :  { %v241_v42 = vpop.f32.mrf.mxu0 }
  0xeb   :  { %v265_v43 = vmax.f32 %v247_v41, 0.0  ;;  %v242_v44 = vadd.f32 %v496_v39, %v241_v42 }
  0xed   :  { %603 = vmatpush3.xpose.msk.msra.mxu1 %vm273_vm2, %v265_v43  ;;  %v264_v46 = vmax.f32 %v242_v44, 0.0 }
  0xee   :  { %604 = vmatprep.subr.mxu1 %v669_v21 }
  0xf1   :  { %605 = vmatpush3.xpose.msk.msra.mxu1 %vm273_vm2, %v264_v46 }
  0xf2   :  { %606 = vmatprep.subr.mxu1 %v669_v21 }
  0xf5   :  { %607 = vmatpush3.xpose.msk.msra.mxu1 %vm273_vm2, %v263_v47 }
  0xf6   :  { %608 = vmatprep.subr.mxu1 %v669_v21 }
  0xf9   :  { %609 = vmatpush3.xpose.msk.msra.mxu1 %vm273_vm2, %v262_v50 }
  0xfa   :  { %610 = vmatprep.subr.mxu1 %v669_v21 }
  0xfd   :  { %611 = vmatpush3.xpose.msk.msra.mxu1 %vm273_vm2, %v261_v51 }
  0xfe   :  { %612 = vmatprep.subr.mxu1 %v669_v21 }
 0x101   :  { %613 = vmatpush3.xpose.msk.msra.mxu1 %vm273_vm2, %v260_v54 }
 0x102   :  { %614 = vmatprep.subr.mxu1 %v669_v21 }
 0x105   :  { %615 = vmatpush3.xpose.msk.msra.mxu1 %vm273_vm2, %v259_v55 }
 0x106   :  { %616 = vmatprep.subr.mxu1 %v669_v21 }
 0x109   :  { %617 = vmatpush3.xpose.msk.msra.mxu1 %vm273_vm2, %v258_v58 }
 0x10a   :  { %618 = vmatprep.subr.mxu1 %v669_v21 }
 0x10d   :  { %619 = vmatpush3.xpose.msk.msra.mxu1 %vm273_vm2, %v257_v59 }
 0x10e   :  { %620 = vmatprep.subr.mxu1 %v669_v21 }
 0x111   :  { %621 = vmatpush3.xpose.msk.msra.mxu1 %vm273_vm2, %v256_v62 }
 0x112   :  { %622 = vmatprep.subr.mxu1 %v669_v21 }
 0x115   :  { %623 = vmatpush3.xpose.msk.msra.mxu1 %vm273_vm2, %v255_v63 }
 0x116   :  { %624 = vmatprep.subr.mxu1 %v669_v21 }
 0x119   :  { %625 = vmatpush3.xpose.msk.msra.mxu1 %vm273_vm2, %v254_v2 }
 0x11a   :  { %626 = vmatprep.subr.mxu1 %v669_v21 }
 0x11d   :  { %627 = vmatpush3.xpose.msk.msra.mxu1 %vm273_vm2, %v253_v3 }
 0x11e   :  { %628 = vmatprep.subr.mxu1 %v669_v21 }
 0x121   :  { %629 = vmatpush3.xpose.msk.msra.mxu1 %vm273_vm2, %v252_v6 }
 0x122   :  { %630 = vmatprep.subr.mxu1 %v669_v21 }
 0x125   :  { %631 = vmatpush3.xpose.msk.msra.mxu1 %vm273_vm2, %v251_v7 }
 0x126   :  { %632 = vmatprep.subr.mxu1 %v669_v21  ;;  %v406_v21 = vrot.slane %v401_v20, %v405_v19 }
 0x129   :  { %633 = vmatpush3.xpose.msk.msra.mxu1 %vm273_vm2, %v250_v9 }
 0x12c   :  { %635 = vmatmul.mubr.msk.f32.vlgmr.msra.gmra.mxu1 %vm273_vm2, %v266_v10 }
 0x1ec   :  { %v391_v12 = vpop.f32.mrf.mxu1 }
 0x1ed   :  { %v392_v13 = vadd.f32 %v391_v12, %v271_v11 }
 0x1ee   :  { %v636_v14 = vpop.f32.mrf.mxu1 }
 0x1ef   :  { %v395_v15 = vmax.f32 %v392_v13, 0.0 }
 0x1f1   :  { %638 = vmatpush3.msra.mxu0 %v395_v15 }
 0x1f2   :  { %640 = vmatmul.mubr.msk.f32.vlgmr.msra.gmra.mxu0 %vm407_vm3, %v396_v16 }
 0x2b2   :  { %v477_v22 = vpop.f32.mrf.mxu0 }
 0x2b3   :  { %v478_v23 = vadd.f32 %v477_v22, %v406_v21 }
 0x2b4   :  { %v641_v24 = vpop.f32.mrf.mxu0 }
 0x2b5   :  { %481 = vst [vmem:[#allocation3] sm:$0x1] %v478_v23 }
 0x2b6   :  { %658 = shalt.err (!%p655_p4)
}
 0x2b7   :  { %491 = dma.vmem_to_hbm [thread:$0]  %s489_s3, 16, %s859_s7, [#allocation4]  }
 0x2b8   :  { %667 = dma.done.wait [#allocation4], 16  }
 0x2b9   :  { %668 = vsyncadd [#allocation4], 4294967280 }
 0x2ba   :  { %495 = vsyncpa [#allocation4], 1 }

</bundles_post_ra>
